<compile_context>
chip_gen: v7x
topology: tpu7x:2x2x1
jax: 0.10.0
libtpu: 0.0.40
codegen_flags: <defaults>
</compile_context>

<pallas_src>
import jax
import jax.numpy as jnp
from jax.experimental import pallas as pl
from jax.experimental.pallas import tpu as pltpu


# ------------------------- tiling helpers -------------------------

def _pick_tile(dim, target, align):
    """Largest tile <= target that divides `dim` and is a multiple of `align`;
    falls back to the full dim (block == array extent is always legal)."""
    if dim <= target:
        return dim
    best = None
    for t in range(align, target + 1, align):
        if dim % t == 0:
            best = t
    return best if best is not None else dim


def _largest_divisor(n, cap):
    for t in range(min(n, cap), 0, -1):
        if n % t == 0:
            return t
    return 1


# ------------------------- Pallas kernels -------------------------

def _matmul_kernel(x_ref, w_ref, o_ref, acc_ref):
    # y = x @ W   (W stored as (D_in, D_out) = PyTorch weight.T)
    @pl.when(pl.program_id(2) == 0)
    def _init():
        acc_ref[...] = jnp.zeros(acc_ref.shape, acc_ref.dtype)

    acc_ref[...] += jnp.dot(x_ref[...], w_ref[...],
                            preferred_element_type=jnp.float32)

    @pl.when(pl.program_id(2) == pl.num_programs(2) - 1)
    def _finalize():
        o_ref[...] = acc_ref[...].astype(o_ref.dtype)


def _matmul_bias_kernel(x_ref, w_ref, b_ref, o_ref, acc_ref):
    @pl.when(pl.program_id(2) == 0)
    def _init():
        acc_ref[...] = jnp.zeros(acc_ref.shape, acc_ref.dtype)

    acc_ref[...] += jnp.dot(x_ref[...], w_ref[...],
                            preferred_element_type=jnp.float32)

    @pl.when(pl.program_id(2) == pl.num_programs(2) - 1)
    def _finalize():
        o_ref[...] = (acc_ref[...] + b_ref[...].astype(jnp.float32)
                      ).astype(o_ref.dtype)


def _flash_attn_kernel(q_ref, k_ref, v_ref, o_ref, m_sc, l_sc, acc_sc):
    # q_ref: (Hb, tq, d)   k_ref/v_ref: (Hb, tkv, d)   o_ref: (Hb, tq, d)
    # softmax scale is already folded into the q projection weights.
    kv = pl.program_id(2)

    @pl.when(kv == 0)
    def _init():
        m_sc[...] = jnp.full(m_sc.shape, -jnp.inf, m_sc.dtype)
        l_sc[...] = jnp.zeros(l_sc.shape, l_sc.dtype)
        acc_sc[...] = jnp.zeros(acc_sc.shape, acc_sc.dtype)

    q = q_ref[...]
    k = k_ref[...]
    # sim[h, i, j] = sum_d q[h, i, d] * k[h, j, d]  ("NT" contraction, no k.T)
    s = jax.lax.dot_general(
        q, k, dimension_numbers=(((2,), (2,)), ((0,), (0,))),
        preferred_element_type=jnp.float32)                    # (Hb, tq, tkv)

    m_prev = m_sc[...]
    m_new = jnp.maximum(m_prev, jnp.max(s, axis=-1, keepdims=True))
    alpha = jnp.exp(m_prev - m_new)
    p = jnp.exp(s - m_new)
    l_sc[...] = alpha * l_sc[...] + jnp.sum(p, axis=-1, keepdims=True)
    pv = jax.lax.dot_general(
        p.astype(v_ref.dtype), v_ref[...],
        dimension_numbers=(((2,), (1,)), ((0,), (0,))),
        preferred_element_type=jnp.float32)                    # (Hb, tq, d)
    acc_sc[...] = alpha * acc_sc[...] + pv
    m_sc[...] = m_new

    @pl.when(kv == pl.num_programs(2) - 1)
    def _finalize():
        # exact reciprocal keeps parity with the f32 reference;
        # approx=True (EUP vrcp) is a cheap option for pure inference.
        inv_l = pl.reciprocal(l_sc[...], approx=False)
        o_ref[...] = (acc_sc[...] * inv_l).astype(o_ref.dtype)


# ------------------------- wrappers -------------------------

def linear(x2d, w, b=None, *, tm=512, tn=512, tk=512):
    """Tiled, pipelined y = x2d @ w (+ b).  x2d: (M, Din), w: (Din, Dout)."""
    M, Din = x2d.shape
    Dout = w.shape[1]
    bm = _pick_tile(M, tm, 8)       # second-minor of x / out blocks
    bk = _pick_tile(Din, tk, 128)   # minor of x block, second-minor of w block
    bn = _pick_tile(Dout, tn, 128)  # minor of w / out blocks
    grid = (M // bm, Dout // bn, Din // bk)
    cp = pltpu.CompilerParams(
        dimension_semantics=("parallel", "parallel", "arbitrary"))

    if b is None:
        return pl.pallas_call(
            _matmul_kernel,
            out_shape=jax.ShapeDtypeStruct((M, Dout), x2d.dtype),
            grid_spec=pltpu.PrefetchScalarGridSpec(
                num_scalar_prefetch=0, grid=grid,
                in_specs=[
                    pl.BlockSpec((bm, bk), lambda i, j, k: (i, k)),
                    pl.BlockSpec((bk, bn), lambda i, j, k: (k, j)),
                ],
                out_specs=pl.BlockSpec((bm, bn), lambda i, j, k: (i, j)),
                scratch_shapes=[pltpu.VMEM((bm, bn), jnp.float32)]),
            compiler_params=cp,
        )(x2d, w)

    b2 = b.reshape(1, Dout)
    return pl.pallas_call(
        _matmul_bias_kernel,
        out_shape=jax.ShapeDtypeStruct((M, Dout), x2d.dtype),
        grid_spec=pltpu.PrefetchScalarGridSpec(
            num_scalar_prefetch=0, grid=grid,
            in_specs=[
                pl.BlockSpec((bm, bk), lambda i, j, k: (i, k)),
                pl.BlockSpec((bk, bn), lambda i, j, k: (k, j)),
                pl.BlockSpec((1, bn), lambda i, j, k: (0, j)),
            ],
            out_specs=pl.BlockSpec((bm, bn), lambda i, j, k: (i, j)),
            scratch_shapes=[pltpu.VMEM((bm, bn), jnp.float32)]),
        compiler_params=cp,
    )(x2d, w, b2)


def flash_attention(q, k, v, *, tq=256, tkv=512, heads_per_step=8):
    """q: (BH, N, d), k/v: (BH, M, d) -> (BH, N, d).  Online-softmax attention.

    Grid = (BH/Hb, N/tq, M/tkv); KV axis last + "arbitrary"; running max/sum/acc
    live in VMEM scratch so the (N, M) score matrix is never materialized.
    """
    BH, N, d = q.shape
    M = k.shape[1]
    hb = _largest_divisor(BH, heads_per_step)
    bq = _pick_tile(N, tq, 8)
    bkv = _pick_tile(M, tkv, 8)
    grid = (BH // hb, N // bq, M // bkv)

    return pl.pallas_call(
        _flash_attn_kernel,
        out_shape=jax.ShapeDtypeStruct((BH, N, d), q.dtype),
        grid_spec=pltpu.PrefetchScalarGridSpec(
            num_scalar_prefetch=0, grid=grid,
            in_specs=[
                pl.BlockSpec((hb, bq, d), lambda b, i, j: (b, i, 0)),
                pl.BlockSpec((hb, bkv, d), lambda b, i, j: (b, j, 0)),
                pl.BlockSpec((hb, bkv, d), lambda b, i, j: (b, j, 0)),
            ],
            out_specs=pl.BlockSpec((hb, bq, d), lambda b, i, j: (b, i, 0)),
            scratch_shapes=[
                pltpu.VMEM((hb, bq, 1), jnp.float32),   # running max
                pltpu.VMEM((hb, bq, 1), jnp.float32),   # running sum
                pltpu.VMEM((hb, bq, d), jnp.float32),   # output accumulator
            ]),
        compiler_params=pltpu.CompilerParams(
            dimension_semantics=("parallel", "parallel", "arbitrary")),
    )(q, k, v)


def cross_attention_forward(x, context, params, heads):
    """Mirror of CrossAttention.forward (mask=None, dropout=0 / eval)."""
    # TODO(synk): optional `mask` argument (masked_fill with -finfo.max before
    # softmax) is not wired in; forward is exercised with mask=None.
    B, N, Dq = x.shape
    self_attn = context is None
    if self_attn:
        context = x
    _, Nc, Dc = context.shape

    wq, wk, wv = params["wq"], params["wk"], params["wv"]
    wo, bo = params["wo"], params["bo"]
    inner = wq.shape[1]
    dim_head = inner // heads
    scale = dim_head ** (-0.5)

    # Fold the softmax scale into the q projection weight (no (N, M) multiply).
    wq_s = wq * scale

    if self_attn and Dc == Dq:
        # Fused q/k/v projection: one pass over x, one kernel launch.
        wqkv = jnp.concatenate([wq_s, wk, wv], axis=1)            # (Dq, 3*inner)
        qkv = linear(x.reshape(B * N, Dq), wqkv)                  # (B*N, 3*inner)
        q2 = qkv[:, :inner]
        k2 = qkv[:, inner:2 * inner]
        v2 = qkv[:, 2 * inner:]
    else:
        q2 = linear(x.reshape(B * N, Dq), wq_s)                   # (B*N, inner)
        wkv = jnp.concatenate([wk, wv], axis=1)                   # (Dc, 2*inner)
        kv = linear(context.reshape(B * Nc, Dc), wkv)             # (B*Nc, 2*inner)
        k2 = kv[:, :inner]
        v2 = kv[:, inner:]

    # 'b n (h d) -> (b h) n d'
    q = q2.reshape(B, N, heads, dim_head).transpose(0, 2, 1, 3).reshape(
        B * heads, N, dim_head)
    k = k2.reshape(B, Nc, heads, dim_head).transpose(0, 2, 1, 3).reshape(
        B * heads, Nc, dim_head)
    v = v2.reshape(B, Nc, heads, dim_head).transpose(0, 2, 1, 3).reshape(
        B * heads, Nc, dim_head)

    out = flash_attention(q, k, v)                                # (b h) n d

    # '(b h) n d -> b n (h d)'
    out = out.reshape(B, heads, N, dim_head).transpose(0, 2, 1, 3)
    out = out.reshape(B * N, inner)

    # to_out: Linear(inner_dim, query_dim) + Dropout(p) (identity in eval)
    out = linear(out, wo, bo).reshape(B, N, Dq)
    return out


# ------------------------- reference & params -------------------------

def reference_forward(x, context, params, heads):
    B, N, Dq = x.shape
    if context is None:
        context = x
    _, Nc, _ = context.shape
    inner = params["wq"].shape[1]
    dim_head = inner // heads
    scale = dim_head ** (-0.5)

    q = (x @ params["wq"]).reshape(B, N, heads, dim_head).transpose(0, 2, 1, 3)
    k = (context @ params["wk"]).reshape(B, Nc, heads, dim_head).transpose(0, 2, 1, 3)
    v = (context @ params["wv"]).reshape(B, Nc, heads, dim_head).transpose(0, 2, 1, 3)
    sim = jnp.einsum("bhid,bhjd->bhij", q, k) * scale
    attn = jax.nn.softmax(sim, axis=-1)
    out = jnp.einsum("bhij,bhjd->bhid", attn, v)
    out = out.transpose(0, 2, 1, 3).reshape(B, N, inner)
    return out @ params["wo"] + params["bo"]


def init_params(key, query_dim, context_dim, heads, dim_head):
    inner_dim = heads * dim_head
    ks = jax.random.split(key, 5)

    def uni(k, fan_in, shape):
        bound = 1.0 / (fan_in ** 0.5)
        return jax.random.uniform(k, shape, jnp.float32, -bound, bound)

    # weights stored as (D_in, D_out)  (= PyTorch nn.Linear weight transposed)
    return {
        "wq": uni(ks[0], query_dim, (query_dim, inner_dim)),
        "wk": uni(ks[1], context_dim, (context_dim, inner_dim)),
        "wv": uni(ks[2], context_dim, (context_dim, inner_dim)),
        "wo": uni(ks[3], inner_dim, (inner_dim, query_dim)),
        "bo": uni(ks[4], inner_dim, (query_dim,)),
    }


# ------------------------- main -------------------------

if __name__ == "__main__":
    key = jax.random.PRNGKey(0)
    kx, kp, kc, kp2 = jax.random.split(key, 4)

    # --- self-attention (context=None), fused QKV path ---
    B, N = 2, 8
    query_dim = 32
    heads, dim_head = 2, 16          # inner_dim = 32
    x = jax.random.normal(kx, (B, N, query_dim), jnp.float32)
    params = init_params(kp, query_dim, query_dim, heads, dim_head)

    out = jax.block_until_ready(cross_attention_forward(x, None, params, heads))
    ref = reference_forward(x, None, params, heads)
    assert out.shape == (B, N, query_dim), out.shape
    assert jnp.allclose(out, ref, atol=2e-5, rtol=2e-5), float(
        jnp.max(jnp.abs(out - ref)))

    # --- cross-attention (separate context, different dims/length) ---
    context_dim, Nc = 48, 12
    ctx = jax.random.normal(kc, (B, Nc, context_dim), jnp.float32)
    params2 = init_params(kp2, query_dim, context_dim, heads, dim_head)

    out2 = jax.block_until_ready(cross_attention_forward(x, ctx, params2, heads))
    ref2 = reference_forward(x, ctx, params2, heads)
    assert out2.shape == (B, N, query_dim), out2.shape
    assert jnp.allclose(out2, ref2, atol=2e-5, rtol=2e-5), float(
        jnp.max(jnp.abs(out2 - ref2)))

    print("KERNEL_OK")
</pallas_src>

<mosaic_0001>
module attributes {stable_mosaic.version = 11 : i64} {
  func.func @_matmul_kernel(%arg0: i32, %arg1: i32, %arg2: i32, %arg3: memref<16x32xf32, #tpu.memory_space<vmem>>, %arg4: memref<32x96xf32, #tpu.memory_space<vmem>>, %arg5: memref<16x96xf32, #tpu.memory_space<vmem>>, %arg6: memref<16x96xf32, #tpu.memory_space<vmem>>) attributes {dimension_semantics = [#tpu.dimension_semantics<parallel>, #tpu.dimension_semantics<parallel>, #tpu.dimension_semantics<arbitrary>], iteration_bounds = array<i64: 1, 1, 1>, scalar_prefetch = 0 : i64, scratch_operands = 1 : i64, tpu.core_type = #tpu.core_type<tc>, window_params = [{transform_indices = @transform_0, window_bounds = array<i64: 16, 32>}, {transform_indices = @transform_1, window_bounds = array<i64: 32, 96>}, {transform_indices = @transform_2, window_bounds = array<i64: 16, 96>}]} {
    %c0_i32 = arith.constant 0 : i32
    %0 = arith.cmpi eq, %arg2, %c0_i32 : i32
    %1 = arith.extui %0 : i1 to i32
    %c0_i32_0 = arith.constant 0 : i32
    %2 = arith.cmpi ne, %1, %c0_i32_0 : i32
    scf.if %2 {
      %cst_10 = arith.constant 0.000000e+00 : f32
      %12 = vector.broadcast %cst_10 : f32 to vector<16x96xf32>
      %c0_11 = arith.constant 0 : index
      %c0_12 = arith.constant 0 : index
      %13 = vector.load %arg6[%c0_11, %c0_12] : memref<16x96xf32, #tpu.memory_space<vmem>>, vector<16x96xf32>
      tpu.vector_store %arg6[%c0_11, %c0_12], %12 {strides = array<i32>} : memref<16x96xf32, #tpu.memory_space<vmem>>, vector<16x96xf32>,
    } else {
    }
    %c0 = arith.constant 0 : index
    %c0_1 = arith.constant 0 : index
    %3 = vector.load %arg6[%c0, %c0_1] : memref<16x96xf32, #tpu.memory_space<vmem>>, vector<16x96xf32>
    %c0_2 = arith.constant 0 : index
    %c0_3 = arith.constant 0 : index
    %4 = vector.load %arg3[%c0_2, %c0_3] : memref<16x32xf32, #tpu.memory_space<vmem>>, vector<16x32xf32>
    %c0_4 = arith.constant 0 : index
    %c0_5 = arith.constant 0 : index
    %5 = vector.load %arg4[%c0_4, %c0_5] : memref<32x96xf32, #tpu.memory_space<vmem>>, vector<32x96xf32>
    %cst = arith.constant dense<0.000000e+00> : vector<16x96xf32>
    %6 = tpu.matmul %4, %5, %cst {dimension_numbers = #tpu.dot_dimension_numbers<[1], [0], [0], [1], [0, 0, 1, 1], [], []>} : vector<16x32xf32>, vector<32x96xf32>, vector<16x96xf32> -> vector<16x96xf32>
    %7 = arith.addf %3, %6 : vector<16x96xf32>
    %c0_6 = arith.constant 0 : index
    %c0_7 = arith.constant 0 : index
    %8 = vector.load %arg6[%c0_6, %c0_7] : memref<16x96xf32, #tpu.memory_space<vmem>>, vector<16x96xf32>
    tpu.vector_store %arg6[%c0_6, %c0_7], %7 {strides = array<i32>} : memref<16x96xf32, #tpu.memory_space<vmem>>, vector<16x96xf32>,
    %c0_i32_8 = arith.constant 0 : i32
    %9 = arith.cmpi eq, %arg2, %c0_i32_8 : i32
    %10 = arith.extui %9 : i1 to i32
    %c0_i32_9 = arith.constant 0 : i32
    %11 = arith.cmpi ne, %10, %c0_i32_9 : i32
    scf.if %11 {
      %c0_10 = arith.constant 0 : index
      %c0_11 = arith.constant 0 : index
      %12 = vector.load %arg6[%c0_10, %c0_11] : memref<16x96xf32, #tpu.memory_space<vmem>>, vector<16x96xf32>
      %c0_12 = arith.constant 0 : index
      %c0_13 = arith.constant 0 : index
      %13 = vector.load %arg5[%c0_12, %c0_13] : memref<16x96xf32, #tpu.memory_space<vmem>>, vector<16x96xf32>
      tpu.vector_store %arg5[%c0_12, %c0_13], %12 {strides = array<i32>} : memref<16x96xf32, #tpu.memory_space<vmem>>, vector<16x96xf32>,
    } else {
    }
    return
  }
  func.func @transform_0(%arg0: i32, %arg1: i32, %arg2: i32) -> (i32, i32) {
    %c0_i32 = arith.constant 0 : i32
    return %arg0, %arg2 : i32, i32
  }
  func.func @transform_1(%arg0: i32, %arg1: i32, %arg2: i32) -> (i32, i32) {
    %c0_i32 = arith.constant 0 : i32
    return %arg2, %arg1 : i32, i32
  }
  func.func @transform_2(%arg0: i32, %arg1: i32, %arg2: i32) -> (i32, i32) {
    %c0_i32 = arith.constant 0 : i32
    return %arg0, %arg1 : i32, i32
  }
}

</mosaic_0001>

<bundles_post_ra>
// kernel: tpu_custom_call.1
= control target key start
LH: loop header
LB: loop body
LE: loop exit
PB: predicated region body
PF: predicated region fallthrough
CT: control target
= control target key end

     0   :  { %7 = vsyncpa [#allocation4], 0  ;;  %s344_s0 = inlined_call_operand.hbm [shape: f32[16,32], index: 0, kind: input, shape index: {}]   ;;  %s345_s1 = inlined_call_operand.hbm [shape: f32[32,96], index: 1, kind: input, shape index: {}]   ;;  %s346_s2 = inlined_call_operand.hbm [shape: f32[16,96], index: 2, kind: output, shape index: {}]  }
   0x1   :  { %8 = vsyncpa [#allocation7], 0 }
   0x2   :  { %9 = vsyncpa [#allocation5], 0  ;;  %s272_s9 = smov [#allocation3]   ;;  %s200_s13 = scalar_lea.hbm %s344_s0, 256 }
   0x3   :  { %s15_s10 = sshll.u32 %s272_s9, 4  ;;  %p201_p0 = scmp.ne.s32.totalorder %s344_s0, %s200_s13  ;;  %s16_s10 = int_to_ptr.vmem [resolvable:$true] %s15_s10 }
   0x4   :  { %p204_p1 = scmp.lt.u32.totalorder %s200_s13, %s344_s0 }
   0x6   :  { %p206_p2 = pnand %p204_p1, %p201_p0 }
   0x8   :  { %209 = shalt.err (!%p206_p2)
}
   0x9   :  { %s210_s18 = scalar_lea.vmem %s16_s10, 256  ;;  %p215_p4 = scmp.lt.s32.totalorder %s16_s10, %s16_s10 }
   0xa   :  { %p211_p3 = scmp.ne.s32.totalorder %s16_s10, %s210_s18  ;;  %p216_p5 = scmp.lt.s32.totalorder %s210_s18, %s210_s18 }
   0xc   :  { %p217_p6 = por %p216_p5, %p215_p4 }
   0xe   :  { %p218_p7 = pnand %p217_p6, %p211_p3 }
  0x10   :  { %221 = shalt.err (!%p218_p7)
}
  0x11   :  { %s273_s19 = smov 128   ;;  %s274_s20 = smov 8  }
  0x12   :  { %21 = dma.hbm_to_vmem [thread:$0]  %s344_s0, 256, %s16_s10, [#allocation4], %s273_s19, %s273_s19, %s274_s20  }
  0x13   :  { %s275_s23 = smov [#allocation6]   ;;  %s222_s27 = scalar_lea.hbm %s345_s1, 512 }
  0x14   :  { %s27_s24 = sshll.u32 %s275_s23, 4  ;;  %p223_p8 = scmp.ne.s32.totalorder %s345_s1, %s222_s27  ;;  %s28_s24 = int_to_ptr.vmem [resolvable:$true] %s27_s24 }
  0x15   :  { %p226_p9 = scmp.lt.u32.totalorder %s222_s27, %s345_s1 }
  0x17   :  { %p228_p10 = pnand %p226_p9, %p223_p8 }
  0x19   :  { %231 = shalt.err (!%p228_p10)
}
  0x1a   :  { %s232_s4 = scalar_lea.vmem %s28_s24, 512  ;;  %p237_p12 = scmp.lt.s32.totalorder %s28_s24, %s28_s24 }
  0x1b   :  { %p233_p11 = scmp.ne.s32.totalorder %s28_s24, %s232_s4  ;;  %p238_p13 = scmp.lt.s32.totalorder %s232_s4, %s232_s4 }
  0x1d   :  { %p239_p0 = por %p238_p13, %p237_p12 }
  0x1f   :  { %p240_p1 = pnand %p239_p0, %p233_p11 }
  0x21   :  { %243 = shalt.err (!%p240_p1)
}
  0x22   :  { %33 = dma.hbm_to_vmem [thread:$0]  %s345_s1, 512, %s28_s24, [#allocation7], %s273_s19, %s273_s19, %s274_s20  }
  0x23   :  { %266 = dma.done.wait [#allocation4], 256  }
  0x24   :  { %267 = vsyncadd [#allocation4], 4294967040 }
  0x25   :  { %268 = dma.done.wait [#allocation7], 512  }
  0x26   :  { %269 = vsyncadd [#allocation7], 4294966784  ;;  %vm44_vm0 = vcmask 785408   ;;  %v276_v0 = vmov 0.0   ;;  %vm55_vm1 = vcmask 261120   ;;  %v51_v1 = vld [vmem:[#allocation6] sm:$0xff] }
  0x27   :  { %46 = vst.msk [vmem:[#allocation2 + $0x8] sm:$0xff] %vm44_vm0, %v276_v0  ;;  %45 = vst.msk [vmem:[#allocation2] sm:$0xff] %vm44_vm0, %v276_v0  ;;  %v52_v2 = vld [vmem:[#allocation6 + $0x8] sm:$0xff]  ;;  %v53_v3 = vld [vmem:[#allocation6 + $0x10] sm:$0xff]  ;;  %s277_s1 = smov [#allocation8]  }
  0x28   :  { %v186_v4 = vpack.c.bf16 %v52_v2, %v51_v1  ;;  %v54_v5 = vld [vmem:[#allocation6 + $0x18] sm:$0xff]  ;;  %v49_v6 = vld [vmem:[#allocation3] sm:$0xff]  ;;  %s154_s6 = sshll.u32 %s277_s1, 4  ;;  %s155_s6 = int_to_ptr.vmem [resolvable:$true] %s154_s6 }
  0x29   :  { %v190_v7 = vpack.c.bf16 %v54_v5, %v53_v3  ;;  %183 = vmatprep.mubr.msk.f32.mxu0 %vm55_vm1, %v49_v6  ;;  %v50_v8 = vld [vmem:[#allocation3 + $0x8] sm:$0xff]  ;;  %s244_s7 = scalar_lea.vmem %s155_s6, 256  ;;  %p249_p3 = scmp.lt.s32.totalorder %s155_s6, %s155_s6 }
  0x2a   :  { %187 = vmatprep.subr.bf16.mxu0 %v186_v4  ;;  %p245_p2 = scmp.ne.s32.totalorder %s155_s6, %s244_s7  ;;  %p250_p4 = scmp.lt.s32.totalorder %s244_s7, %s244_s7 }
  0x2b   :  { %189 = vmatpush3.bf16.msra.mxu0 %v186_v4 }
  0x2c   :  { %191 = vmatprep.subr.bf16.mxu0 %v190_v7  ;;  %p251_p5 = por %p250_p4, %p249_p3 }
  0x2e   :  { %v48_v9 = vld [vmem:[#allocation2 + $0x8] sm:$0xff]  ;;  %v47_v10 = vld [vmem:[#allocation2] sm:$0xff]  ;;  %p252_p6 = pnand %p251_p5, %p245_p2 }
  0x2f   :  { %193 = vmatpush3.bf16.msra.mxu0 %v190_v7 }
  0x32   :  { %184 = vmatmul.mubr.msk.f32.vlgmr.msra.gmra.mrb[0].mxu0 %vm55_vm1, %v50_v8 }
 0x105   :  { %v185_v11 = vpop.f32.mrb[0].mxu0 }
 0x106   :  { %v138_v12 = vadd.f32 %v185_v11, %v48_v9  ;;  %v128_v13 = vpop.f32.mrb[1].mxu0 }
 0x107   :  { %v137_v14 = vadd.f32 %v128_v13, %v47_v10 }
 0x108   :  { %141 = vst.msk [vmem:[#allocation2 + $0x8] sm:$0xff] %vm44_vm0, %v138_v12 }
 0x109   :  { %140 = vst.msk [vmem:[#allocation2] sm:$0xff] %vm44_vm0, %v137_v14 }
 0x10f   :  { %v146_v15 = vld [vmem:[#allocation2 + $0x8] sm:$0xff] }
 0x110   :  { %v145_v16 = vld [vmem:[#allocation2] sm:$0xff]  ;;  %148 = vst.msk [vmem:[#allocation8 + $0x8] sm:$0xff] %vm44_vm0, %v146_v15 }
 0x111   :  { %147 = vst.msk [vmem:[#allocation8] sm:$0xff] %vm44_vm0, %v145_v16 }
 0x112   :  { %255 = shalt.err (!%p252_p6)
}
 0x113   :  { %s256_s10 = scalar_lea.hbm %s346_s2, 256 }
 0x114   :  { %p257_p7 = scmp.ne.s32.totalorder %s346_s2, %s256_s10  ;;  %p260_p8 = scmp.lt.u32.totalorder %s256_s10, %s346_s2 }
 0x116   :  { %p262_p9 = pnand %p260_p8, %p257_p7 }
 0x118   :  { %265 = shalt.err (!%p262_p9)
}
 0x119   :  { %160 = dma.vmem_to_hbm [thread:$0]  %s155_s6, 256, %s346_s2, [#allocation5], %s273_s19, %s273_s19, %s274_s20  }
 0x11a   :  { %270 = dma.done.wait [#allocation5], 256  }
 0x11b   :  { %271 = vsyncadd [#allocation5], 4294967040 }
 0x11c   :  { %164 = vsyncpa [#allocation4], 1 }
 0x11d   :  { %165 = vsyncpa [#allocation7], 1 }
 0x11e   :  { %166 = vsyncpa [#allocation5], 1 }

</bundles_post_ra>
